<compile_context>
chip_gen: v7x
topology: tpu7x:2x2x1
jax: 0.10.0
libtpu: 0.0.40
codegen_flags: <defaults>
</compile_context>

<pallas_src>
import jax
import jax.numpy as jnp
from jax import lax
from jax.experimental import pallas as pl
from jax.experimental.pallas import tpu as pltpu

# ---- model hyper-parameters (small, synthetic) -------------------------------
BERT_SIZE = 32
CONTEXT_LENGTH = 4
CITED_SIZE = 3
HIDDEN = 2 * BERT_SIZE                     # 64
CTX_IN = CONTEXT_LENGTH * BERT_SIZE        # 128
CIT_IN = CITED_SIZE * BERT_SIZE            # 96

# contract last (feature) dim of both operands: (H, K) x (TB, K) -> (H, TB)
_TRANS_B_DIMS = (((1,), (1,)), ((), ()))


def net_kernel(ctx_ref, cit_ref, wctx_ref, wcit_ref, b_ref, o_ref):
    # ctx_ref : (TB, CTX_IN) f32   -- context activations, batch on sublanes
    # cit_ref : (TB, CIT_IN) f32   -- cited activations
    # wctx_ref: (HIDDEN, CTX_IN) bf16  -- w_ctx^T           (VMEM-resident)
    # wcit_ref: (HIDDEN, CIT_IN) bf16  -- (-w_cit)^T        (VMEM-resident)
    # b_ref   : (HIDDEN, 1) f32        -- b_ctx - b_cit     (VMEM-resident)
    # o_ref   : (1, TB) f32            -- per-row distance, lane-dense
    x_ctx = ctx_ref[...].astype(jnp.bfloat16)
    x_cit = cit_ref[...].astype(jnp.bfloat16)
    e = lax.dot_general(wctx_ref[...], x_ctx, _TRANS_B_DIMS,
                        preferred_element_type=jnp.float32)          # (H, TB)
    e = e + lax.dot_general(wcit_ref[...], x_cit, _TRANS_B_DIMS,
                            preferred_element_type=jnp.float32)      # + (-cit path)
    e = e + b_ref[...]                                               # bias diff, bcast over lanes
    s = jnp.sum(e * e, axis=0, keepdims=True)                        # sublane reduce -> (1, TB)
    o_ref[...] = jnp.sqrt(s)


def _pick_batch_tile(B, tb):
    """Batch tile: a single full-array block for tiny batches, otherwise a
    multiple of 128 (lane-dense output blocks), capped so the grid keeps >= 2
    steps for moderate/large B (lets the 'parallel' axis shard across the two
    TensorCores on v7x)."""
    if B <= 256:
        return B
    cap = pl.cdiv(B, 2 * 128) * 128          # ~B/2 rounded up to 128
    tb_eff = min(tb, cap)
    return max(128, (tb_eff // 128) * 128)


def net_forward(context, cited, wT_ctx, wT_cit_neg, b_fused, *, tb=4096):
    """context: (B, CTX_IN) f32, cited: (B, CIT_IN) f32 -> (B,) f32."""
    B = context.shape[0]
    tb_eff = _pick_batch_tile(B, tb)
    grid = (pl.cdiv(B, tb_eff),)

    out = pl.pallas_call(
        net_kernel,
        out_shape=jax.ShapeDtypeStruct((1, B), jnp.float32),
        grid_spec=pl.GridSpec(
            grid=grid,
            in_specs=[
                pl.BlockSpec((tb_eff, CTX_IN), lambda i: (i, 0)),   # tile batch (sublanes)
                pl.BlockSpec((tb_eff, CIT_IN), lambda i: (i, 0)),   # tile batch (sublanes)
                pl.BlockSpec((HIDDEN, CTX_IN), lambda i: (0, 0)),   # weight: VMEM-resident
                pl.BlockSpec((HIDDEN, CIT_IN), lambda i: (0, 0)),   # weight: VMEM-resident
                pl.BlockSpec((HIDDEN, 1), lambda i: (0, 0)),        # bias:   VMEM-resident
            ],
            out_specs=pl.BlockSpec((1, tb_eff), lambda i: (0, i)),  # lane-dense output row
        ),
        compiler_params=pltpu.CompilerParams(
            dimension_semantics=("parallel",)),                     # megacore-shardable
    )(context, cited, wT_ctx, wT_cit_neg, b_fused)
    return out[0]


def init_params(key):
    """Deterministic init mirroring nn.Linear (weights stored as (in, out))."""
    k1, k2, k3, k4 = jax.random.split(key, 4)
    bound_ctx = 1.0 / (CTX_IN ** 0.5)
    bound_cit = 1.0 / (CIT_IN ** 0.5)
    w_ctx = jax.random.uniform(k1, (CTX_IN, HIDDEN), jnp.float32, -bound_ctx, bound_ctx)
    b_ctx = jax.random.uniform(k2, (1, HIDDEN), jnp.float32, -bound_ctx, bound_ctx)
    w_cit = jax.random.uniform(k3, (CIT_IN, HIDDEN), jnp.float32, -bound_cit, bound_cit)
    b_cit = jax.random.uniform(k4, (1, HIDDEN), jnp.float32, -bound_cit, bound_cit)
    return w_ctx, b_ctx, w_cit, b_cit


def prepare_params(w_ctx, b_ctx, w_cit, b_cit):
    """One-time at init: transpose to (out, in) for the trans_b dot, negate the
    cited weight (so the kernel accumulates ctx@Wc - cit@Wd in one f32 acc),
    fold the bias difference.  bf16 MXU operands; bias stays f32."""
    wT_ctx = jnp.asarray(w_ctx.T, dtype=jnp.bfloat16)                 # (64, 128)
    wT_cit_neg = jnp.asarray((-w_cit).T, dtype=jnp.bfloat16)          # (64, 96)
    b_fused = (b_ctx - b_cit).reshape(HIDDEN, 1).astype(jnp.float32)  # (64, 1)
    return wT_ctx, wT_cit_neg, b_fused


if __name__ == "__main__":
    key = jax.random.PRNGKey(0)
    kp, kc, kd, kc2, kd2 = jax.random.split(key, 5)

    w_ctx, b_ctx, w_cit, b_cit = init_params(kp)
    wT_ctx, wT_cit_neg, b_fused = prepare_params(w_ctx, b_ctx, w_cit, b_cit)

    def ref_fn(ctx, cit):
        ce = ctx @ w_ctx + b_ctx
        de = cit @ w_cit + b_cit
        return jnp.sqrt(jnp.sum((ce - de) ** 2, axis=1))

    # ---- small case (B=2), single full-array block ---------------------------
    B = 2
    context = jax.random.normal(kc, (B, CTX_IN), jnp.float32)
    cited = jax.random.normal(kd, (B, CIT_IN), jnp.float32)
    out = jax.block_until_ready(
        net_forward(context, cited, wT_ctx, wT_cit_neg, b_fused))
    ref = ref_fn(context, cited)
    assert out.shape == (B,)
    assert jnp.allclose(out, ref, rtol=2e-2, atol=1e-2), (out, ref)

    # ---- tiled case (B=300, tb=128): grid of 3, ragged last block masked ------
    B2 = 300
    context2 = jax.random.normal(kc2, (B2, CTX_IN), jnp.float32)
    cited2 = jax.random.normal(kd2, (B2, CIT_IN), jnp.float32)
    out2 = jax.block_until_ready(
        net_forward(context2, cited2, wT_ctx, wT_cit_neg, b_fused, tb=128))
    ref2 = ref_fn(context2, cited2)
    assert out2.shape == (B2,)
    assert jnp.allclose(out2, ref2, rtol=2e-2, atol=1e-2)

    print("KERNEL_OK")
</pallas_src>

<mosaic_0001>
module attributes {stable_mosaic.version = 11 : i64} {
  func.func @net_kernel(%arg0: i32, %arg1: memref<2x128xf32, #tpu.memory_space<vmem>>, %arg2: memref<2x96xf32, #tpu.memory_space<vmem>>, %arg3: memref<64x128xbf16, #tpu.memory_space<vmem>>, %arg4: memref<64x96xbf16, #tpu.memory_space<vmem>>, %arg5: memref<64x1xf32, #tpu.memory_space<vmem>>, %arg6: memref<1x2xf32, #tpu.memory_space<vmem>>) attributes {dimension_semantics = [#tpu.dimension_semantics<parallel>], iteration_bounds = array<i64: 1>, scalar_prefetch = 0 : i64, scratch_operands = 0 : i64, tpu.core_type = #tpu.core_type<tc>, window_params = [{transform_indices = @transform_0, window_bounds = array<i64: 2, 128>}, {transform_indices = @transform_1, window_bounds = array<i64: 2, 96>}, {pipeline_mode = #tpu.pipeline_mode<synchronous>, transform_indices = @transform_2, window_bounds = array<i64: 64, 128>}, {pipeline_mode = #tpu.pipeline_mode<synchronous>, transform_indices = @transform_3, window_bounds = array<i64: 64, 96>}, {pipeline_mode = #tpu.pipeline_mode<synchronous>, transform_indices = @transform_4, window_bounds = array<i64: 64, 1>}, {transform_indices = @transform_5, window_bounds = array<i64: 1, 2>}]} {
    %c0 = arith.constant 0 : index
    %c0_0 = arith.constant 0 : index
    %0 = vector.load %arg1[%c0, %c0_0] : memref<2x128xf32, #tpu.memory_space<vmem>>, vector<2x128xf32>
    %1 = arith.truncf %0 : vector<2x128xf32> to vector<2x128xbf16>
    %c0_1 = arith.constant 0 : index
    %c0_2 = arith.constant 0 : index
    %2 = vector.load %arg2[%c0_1, %c0_2] : memref<2x96xf32, #tpu.memory_space<vmem>>, vector<2x96xf32>
    %3 = arith.truncf %2 : vector<2x96xf32> to vector<2x96xbf16>
    %c0_3 = arith.constant 0 : index
    %c0_4 = arith.constant 0 : index
    %4 = vector.load %arg3[%c0_3, %c0_4] : memref<64x128xbf16, #tpu.memory_space<vmem>>, vector<64x128xbf16>
    %cst = arith.constant dense<0.000000e+00> : vector<64x2xf32>
    %5 = tpu.matmul %4, %1, %cst {dimension_numbers = #tpu.dot_dimension_numbers<[1], [1], [0], [0], [0, 0, 1, 0], [], []>} : vector<64x128xbf16>, vector<2x128xbf16>, vector<64x2xf32> -> vector<64x2xf32>
    %c0_5 = arith.constant 0 : index
    %c0_6 = arith.constant 0 : index
    %6 = vector.load %arg4[%c0_5, %c0_6] : memref<64x96xbf16, #tpu.memory_space<vmem>>, vector<64x96xbf16>
    %cst_7 = arith.constant dense<0.000000e+00> : vector<64x2xf32>
    %7 = tpu.matmul %6, %3, %cst_7 {dimension_numbers = #tpu.dot_dimension_numbers<[1], [1], [0], [0], [0, 0, 1, 0], [], []>} : vector<64x96xbf16>, vector<2x96xbf16>, vector<64x2xf32> -> vector<64x2xf32>
    %8 = arith.addf %5, %7 : vector<64x2xf32>
    %c0_8 = arith.constant 0 : index
    %c0_9 = arith.constant 0 : index
    %9 = vector.load %arg5[%c0_8, %c0_9] : memref<64x1xf32, #tpu.memory_space<vmem>>, vector<64x1xf32>
    %10 = vector.broadcast %9 : vector<64x1xf32> to vector<64x2xf32>
    %11 = arith.addf %8, %10 : vector<64x2xf32>
    %12 = arith.mulf %11, %11 : vector<64x2xf32>
    %cst_10 = arith.constant dense<0.000000e+00> : vector<2xf32>
    %13 = vector.multi_reduction <add>, %12, %cst_10 [0] : vector<64x2xf32> to vector<2xf32>
    %14 = vector.shape_cast %13 : vector<2xf32> to vector<1x2xf32>
    %15 = math.sqrt %14 : vector<1x2xf32>
    %c0_11 = arith.constant 0 : index
    %c0_12 = arith.constant 0 : index
    %16 = vector.load %arg6[%c0_11, %c0_12] : memref<1x2xf32, #tpu.memory_space<vmem>>, vector<1x2xf32>
    tpu.vector_store %arg6[%c0_11, %c0_12], %15 {strides = array<i32>} : memref<1x2xf32, #tpu.memory_space<vmem>>, vector<1x2xf32>,
    return
  }
  func.func @transform_0(%arg0: i32) -> (i32, i32) {
    %c0_i32 = arith.constant 0 : i32
    %c0_i32_0 = arith.constant 0 : i32
    return %arg0, %c0_i32 : i32, i32
  }
  func.func @transform_1(%arg0: i32) -> (i32, i32) {
    %c0_i32 = arith.constant 0 : i32
    %c0_i32_0 = arith.constant 0 : i32
    return %arg0, %c0_i32 : i32, i32
  }
  func.func @transform_2(%arg0: i32) -> (i32, i32) {
    %c0_i32 = arith.constant 0 : i32
    %c0_i32_0 = arith.constant 0 : i32
    %c0_i32_1 = arith.constant 0 : i32
    return %c0_i32, %c0_i32_0 : i32, i32
  }
  func.func @transform_3(%arg0: i32) -> (i32, i32) {
    %c0_i32 = arith.constant 0 : i32
    %c0_i32_0 = arith.constant 0 : i32
    %c0_i32_1 = arith.constant 0 : i32
    return %c0_i32, %c0_i32_0 : i32, i32
  }
  func.func @transform_4(%arg0: i32) -> (i32, i32) {
    %c0_i32 = arith.constant 0 : i32
    %c0_i32_0 = arith.constant 0 : i32
    %c0_i32_1 = arith.constant 0 : i32
    return %c0_i32, %c0_i32_0 : i32, i32
  }
  func.func @transform_5(%arg0: i32) -> (i32, i32) {
    %c0_i32 = arith.constant 0 : i32
    %c0_i32_0 = arith.constant 0 : i32
    return %c0_i32, %arg0 : i32, i32
  }
}

</mosaic_0001>

<bundles_post_ra>
// kernel: tpu_custom_call.1
= control target key start
LH: loop header
LB: loop body
LE: loop exit
PB: predicated region body
PF: predicated region fallthrough
CT: control target
= control target key end

     0   :  { %10 = vsyncpa [#allocation3], 0  ;;  %s590_s0 = inlined_call_operand.hbm [shape: f32[2,128], index: 0, kind: input, shape index: {}]   ;;  %s591_s1 = inlined_call_operand.vmem [shape: f32[2,96], index: 1, kind: input, shape index: {}]   ;;  %s592_s2 = inlined_call_operand.vmem [shape: bf16[64,128], index: 2, kind: input, shape index: {}]   ;;  %s593_s3 = inlined_call_operand.vmem [shape: bf16[64,96], index: 3, kind: input, shape index: {}]   ;;  %s594_s4 = inlined_call_operand.vmem [shape: f32[64,1], index: 4, kind: input, shape index: {}]   ;;  %s595_s5 = inlined_call_operand.hbm [shape: f32[1,2], index: 5, kind: output, shape index: {}]  }
   0x1   :  { %11 = vsyncpa [#allocation4], 0  ;;  %s468_s18 = smov [#allocation2]   ;;  %s420_s22 = scalar_lea.hbm %s590_s0, 32 }
   0x2   :  { %s18_s19 = sshll.u32 %s468_s18, 4  ;;  %p421_p0 = scmp.ne.s32.totalorder %s590_s0, %s420_s22  ;;  %s19_s19 = int_to_ptr.vmem [resolvable:$true] %s18_s19 }
   0x3   :  { %p424_p1 = scmp.lt.u32.totalorder %s420_s22, %s590_s0 }
   0x5   :  { %p426_p2 = pnand %p424_p1, %p421_p0 }
   0x7   :  { %429 = shalt.err (!%p426_p2)
}
   0x8   :  { %s430_s27 = scalar_lea.vmem %s19_s19, 32  ;;  %p435_p4 = scmp.lt.s32.totalorder %s19_s19, %s19_s19 }
   0x9   :  { %p431_p3 = scmp.ne.s32.totalorder %s19_s19, %s430_s27  ;;  %p436_p5 = scmp.lt.s32.totalorder %s430_s27, %s430_s27 }
   0xb   :  { %p437_p6 = por %p436_p5, %p435_p4 }
   0xd   :  { %p438_p7 = pnand %p437_p6, %p431_p3 }
   0xf   :  { %441 = shalt.err (!%p438_p7)
}
  0x10   :  { %21 = dma.hbm_to_vmem [thread:$0]  %s590_s0, 32, %s19_s19, [#allocation3]  }
  0x11   :  { %464 = dma.done.wait [#allocation3], 32  }
  0x12   :  { %465 = vsyncadd [#allocation3], 4294967264  ;;  %v469_v0 = vmov 0   ;;  %vm74_vm0 = vcmask 785408   ;;  %v36_v1 = vld [vmem:[%s591_s1] sm:$0x3] }
  0x13   :  { %408 = vset.pattern.permute.xlu0 %v469_v0  ;;  %409 = vset.pattern.permute.xlu1 %v469_v0  ;;  %v34_v2 = vld [vmem:[#allocation2] sm:$0x3]  ;;  %v37_v3 = vpack.c.bf16 %v36_v1, %v36_v1  ;;  %v412_v8 = vld [vmem:[%s593_s3 + $0x8] sm:$0xff]   ;;  %v414_v10 = vld [vmem:[%s593_s3 + $0x10] sm:$0xff]   ;;  %vm308_vm1 = vcmask 15360   ;;  %vm337_vm3 = vcmask 8192  }
  0x14   :  { %v35_v4 = vpack.c.bf16 %v34_v2, %v34_v2  ;;  %v410_v5 = vld [vmem:[%s593_s3] sm:$0xff]   ;;  %v413_v9 = vld [vmem:[%s592_s2 + $0x8] sm:$0xff]   ;;  %v415_v11 = vld [vmem:[%s592_s2 + $0x10] sm:$0xff]  }
  0x15   :  { %v411_v6 = vld [vmem:[%s592_s2] sm:$0xff]   ;;  %404 = vmatprep.subr.msk.bf16.mxu1 %vm74_vm0, %v37_v3  ;;  %v88_v7 = vsel %vm74_vm0, %v37_v3, 0  ;;  %378 = vmatprep.mubr.msk.bf16.mxu1 %vm74_vm0, %v410_v5  ;;  %v246_v13 = vld [vmem:[%s594_s4 + $0x10] sm:$0xff]  ;;  %v245_v14 = vld [vmem:[%s594_s4 + $0x8] sm:$0xff] }
  0x16   :  { %386 = vmatprep.subr.bf16.mxu0 %v35_v4  ;;  %377 = vmatpush3.bf16.xpose.msra.mxu1 %v88_v7  ;;  %v244_v12 = vld [vmem:[%s594_s4] sm:$0xff]  ;;  %v247_v15 = vld [vmem:[%s594_s4 + $0x18] sm:$0xff]  ;;  %v249_v19 = vld [vmem:[%s594_s4 + $0x28] sm:$0xff] }
  0x17   :  { %387 = vmatpush3.bf16.xpose.msra.mxu0 %v35_v4  ;;  %388 = vmatprep.mubr.bf16.mxu0 %v411_v6  ;;  %v248_v16 = vld [vmem:[%s594_s4 + $0x20] sm:$0xff]  ;;  %v416_v17 = vld [vmem:[%s593_s3 + $0x18] sm:$0xff]   ;;  %v250_v20 = vld [vmem:[%s594_s4 + $0x30] sm:$0xff] }
  0x18   :  { %254 = vperm.xlu0 %408, %v244_v12   ;;  %264 = vperm.xlu1 %409, %v246_v13   ;;  %v417_v18 = vld [vmem:[%s592_s2 + $0x18] sm:$0xff]   ;;  %s470_s2 = smov [#allocation5]  }
  0x19   :  { %v251_v21 = vld [vmem:[%s594_s4 + $0x38] sm:$0xff]  ;;  %s345_s3 = sshll.u32 %s470_s2, 4  ;;  %s346_s3 = int_to_ptr.vmem [resolvable:$true] %s345_s3 }
  0x1a   :  { %s442_s4 = scalar_lea.vmem %s346_s3, 16  ;;  %s446_s1 = scalar_lea.vmem %s346_s3, 32 }
  0x1b   :  { %p443_p8 = scmp.ne.s32.totalorder %s346_s3, %s442_s4  ;;  %p447_p9 = scmp.lt.s32.totalorder %s346_s3, %s346_s3 }
  0x1c   :  { %259 = vperm.xlu0 %408, %v245_v14   ;;  %269 = vperm.xlu1 %409, %v247_v15   ;;  %p448_p10 = scmp.lt.s32.totalorder %s446_s1, %s442_s4 }
  0x1d   :  { %379 = vmatmul.mubr.msk.bf16.vlgmr.msra.gmra.mrb[0].mxu1 %vm74_vm0, %v412_v8 }
  0x1e   :  { %389 = vmatmul.mubr.bf16.vlgmr.msra.gmra.mrb[0].mxu0 %v413_v9  ;;  %382 = vmatprep.mubr.msk.bf16.mxu1 %vm74_vm0, %v414_v10  ;;  %p449_p11 = por %p448_p10, %p447_p9 }
  0x1f   :  { %392 = vmatprep.mubr.bf16.mxu0 %v415_v11 }
  0x20   :  { %274 = vperm.xlu0 %408, %v248_v16   ;;  %279 = vperm.xlu1 %409, %v249_v19   ;;  %p450_p12 = pnand %p449_p11, %p443_p8 }
  0x24   :  { %284 = vperm.xlu0 %408, %v250_v20   ;;  %289 = vperm.xlu1 %409, %v251_v21  }
  0x25   :  { %383 = vmatmul.mubr.msk.bf16.gmra.mrb[4].mxu1 %vm74_vm0, %v416_v17 }
  0x26   :  { %393 = vmatmul.mubr.bf16.gmra.mrb[4].mxu0 %v417_v18 }
  0x97   :  { %v255_v22 = vpop.permute.xlu0 %254  ;;  %v265_v23 = vpop.permute.xlu1 %264 }
  0x9b   :  { %v260_v24 = vpop.permute.xlu0 %259  ;;  %v270_v25 = vpop.permute.xlu1 %269 }
  0x9f   :  { %v275_v26 = vpop.permute.xlu0 %274  ;;  %v280_v44 = vpop.permute.xlu1 %279 }
  0xa3   :  { %v285_v45 = vpop.permute.xlu0 %284  ;;  %v290_v4 = vpop.permute.xlu1 %289 }
  0xf0   :  { %v380_v27 = vpop.f32.mrb[0].mxu1 }
  0xf1   :  { %v390_v28 = vpop.f32.mrb[0].mxu0  ;;  %v124_v30 = vpop.f32.mrb[1].mxu1 }
  0xf2   :  { %v222_v29 = vadd.f32 %v390_v28, %v380_v27  ;;  %v213_v31 = vpop.f32.mrb[1].mxu0  ;;  %v381_v33 = vpop.f32.mrb[2].mxu1 }
  0xf3   :  { %v214_v32 = vadd.f32 %v213_v31, %v124_v30  ;;  %v391_v34 = vpop.f32.mrb[2].mxu0  ;;  %v127_v36 = vpop.f32.mrb[3].mxu1 }
  0xf4   :  { %v225_v35 = vadd.f32 %v391_v34, %v381_v33  ;;  %v216_v37 = vpop.f32.mrb[3].mxu0  ;;  %v294_v38 = vadd.f32 %v265_v23, %v222_v29 }
  0xf5   :  { %v292_v39 = vadd.f32 %v255_v22, %v214_v32  ;;  %v217_v40 = vadd.f32 %v216_v37, %v127_v36 }
  0xf6   :  { %v295_v42 = vadd.f32 %v270_v25, %v225_v35  ;;  %v302_v46 = vmul.f32 %v294_v38, %v294_v38 }
  0xf7   :  { %v300_v41 = vmul.f32 %v292_v39, %v292_v39  ;;  %v293_v43 = vadd.f32 %v260_v24, %v217_v40 }
  0xf8   :  { %v384_v48 = vpop.f32.mrb[4].mxu1  ;;  %v303_v54 = vmul.f32 %v295_v42, %v295_v42  ;;  %v312_v63 = vsel %vm308_vm1, %v302_v46, 0.0 }
  0xf9   :  { %v301_v47 = vmul.f32 %v293_v43, %v293_v43  ;;  %v394_v49 = vpop.f32.mrb[4].mxu0  ;;  %v140_v51 = vpop.f32.mrb[5].mxu1  ;;  %v309_v53 = vsel %vm308_vm1, %v300_v41, 0.0 }
  0xfa   :  { %v238_v50 = vadd.f32 %v394_v49, %v384_v48  ;;  %v229_v52 = vpop.f32.mrb[5].mxu0  ;;  %v385_v57 = vpop.f32.mrb[6].mxu1  ;;  %v314_v5 = vsel %vm308_vm1, %v303_v54, 0.0 }
  0xfb   :  { %v310_v55 = vsel %vm308_vm1, %v301_v47, 0.0  ;;  %v230_v56 = vadd.f32 %v229_v52, %v140_v51  ;;  %v395_v58 = vpop.f32.mrb[6].mxu0  ;;  %v143_v61 = vpop.f32.mrb[7].mxu1 }
  0xfc   :  { %v311_v59 = vadd.f32 %v310_v55, %v309_v53  ;;  %v241_v60 = vadd.f32 %v395_v58, %v385_v57  ;;  %v232_v62 = vpop.f32.mrb[7].mxu0  ;;  %v298_v0 = vadd.f32 %v285_v45, %v238_v50 }
  0xfd   :  { %v296_v1 = vadd.f32 %v275_v26, %v230_v56  ;;  %v233_v2 = vadd.f32 %v232_v62, %v143_v61 }
  0xfe   :  { %v313_v3 = vadd.f32 %v312_v63, %v311_v59  ;;  %v299_v7 = vadd.f32 %v290_v4, %v241_v60  ;;  %v306_v10 = vmul.f32 %v298_v0, %v298_v0 }
  0xff   :  { %v304_v6 = vmul.f32 %v296_v1, %v296_v1  ;;  %v297_v8 = vadd.f32 %v280_v44, %v233_v2 }
 0x100   :  { %v315_v9 = vadd.f32 %v314_v5, %v313_v3  ;;  %v307_v14 = vmul.f32 %v299_v7, %v299_v7  ;;  %v320_v17 = vsel %vm308_vm1, %v306_v10, 0.0 }
 0x101   :  { %v316_v11 = vsel %vm308_vm1, %v304_v6, 0.0  ;;  %v305_v12 = vmul.f32 %v297_v8, %v297_v8 }
 0x102   :  { %v317_v13 = vadd.f32 %v316_v11, %v315_v9  ;;  %v322_v19 = vsel %vm308_vm1, %v307_v14, 0.0 }
 0x103   :  { %v318_v15 = vsel %vm308_vm1, %v305_v12, 0.0 }
 0x104   :  { %v319_v16 = vadd.f32 %v318_v15, %v317_v13 }
 0x106   :  { %v321_v18 = vadd.f32 %v320_v17, %v319_v16 }
 0x108   :  { %v323_v20 = vadd.f32 %v322_v19, %v321_v18 }
 0x10a   :  { %v324_v21 = vrot.slane %v323_v20, 4 }
 0x10c   :  { %v325_v22 = vadd.f32 %v324_v21, %v323_v20 }
 0x10e   :  { %v326_v23 = vrot.slane %v325_v22, 2 }
 0x110   :  { %v327_v24 = vadd.f32 %v326_v23, %v325_v22 }
 0x112   :  { %v328_v25 = vrot.slane %v327_v24, 1 }
 0x114   :  { %v329_v26 = vadd.f32 %v328_v25, %v327_v24 }
 0x116   :  { %418 = vrsqrt.f32 %v329_v26  ;;  %vm332_vm2 = vcmp.eq.f32.partialorder %v329_v26, inf  ;;  %v335_v29 = vand.u32 2147483648, %v329_v26  ;;  %vm334_vm4 = vcmp.eq.f32.partialorder %v329_v26, 0.0 }
 0x120   :  { %v419_v27 = vpop.eup %418 }
 0x121   :  { %v331_v28 = vmul.f32 %v419_v27, %v329_v26 }
 0x123   :  { %v333_v30 = vsel %vm332_vm2, %v329_v26, %v331_v28 }
 0x124   :  { %v336_v31 = vsel %vm334_vm4, %v335_v29, %v333_v30 }
 0x125   :  { %338 = vst.msk [vmem:[#allocation5] sm:$0x1] %vm337_vm3, %v336_v31 }
 0x126   :  { %453 = shalt.err (!%p450_p12)
}
 0x127   :  { %s454_s13 = scalar_lea.hbm %s595_s5, 16 }
 0x128   :  { %p455_p13 = scmp.ne.s32.totalorder %s595_s5, %s454_s13  ;;  %p458_p0 = scmp.lt.u32.totalorder %s454_s13, %s595_s5 }
 0x12a   :  { %p460_p1 = pnand %p458_p0, %p455_p13 }
 0x12c   :  { %463 = shalt.err (!%p460_p1)
}
 0x12d   :  { %348 = dma.vmem_to_hbm [thread:$0]  %s346_s3, 16, %s595_s5, [#allocation4]  }
 0x12e   :  { %466 = dma.done.wait [#allocation4], 16  }
 0x12f   :  { %467 = vsyncadd [#allocation4], 4294967280 }
 0x130   :  { %352 = vsyncpa [#allocation3], 1 }
 0x131   :  { %353 = vsyncpa [#allocation4], 1 }

</bundles_post_ra>
